<compile_context>
chip_gen: v7x
topology: tpu7x:2x2x1
jax: 0.10.0
libtpu: 0.0.40
codegen_flags: <defaults>
</compile_context>

<pallas_src>
import functools

import jax
import jax.numpy as jnp
from jax.experimental import pallas as pl
from jax.experimental.pallas import tpu as pltpu


def _round_up(x, m):
    return ((x + m - 1) // m) * m


def _tpu_generation_info():
    """Best-effort TPU generation probe -> (num_tensorcores, vmem_limit_bytes)."""
    try:
        kind = jax.devices()[0].device_kind.lower()
    except Exception:  # pragma: no cover
        kind = ""
    if ("v7" in kind) or ("tpu7" in kind):
        # v7x: 64 MiB VMEM per TensorCore, 2 TCs per chip -> conservative cap.
        return 2, 48 * 1024 * 1024
    # v5e / v6e: 128 MiB physical VMEM, single TensorCore.
    return 1, 100 * 1024 * 1024


def _const_spec(shape, index_map, single_buffer):
    """BlockSpec for a weight with a constant index map (DMA'd once, VMEM-resident).

    Single-buffered when supported (no point double-buffering a constant block)."""
    if single_buffer:
        return pl.BlockSpec(shape, index_map, pipeline_mode=pl.Buffered(1))
    return pl.BlockSpec(shape, index_map)


# ---------------------------------------------------------------------------
# Kernel 1: input projection  G = x @ [Wz | Wr | Wh] + [bz | br | bh]
# No sequential dependency -> row-tiled matmul, parallel grid.
# ---------------------------------------------------------------------------
def _input_proj_kernel(x_ref, w_ref, b_ref, out_ref):
    acc = jnp.dot(x_ref[...].astype(w_ref.dtype), w_ref[...],
                  preferred_element_type=jnp.float32)
    out_ref[...] = (acc + b_ref[...]).astype(out_ref.dtype)


# ---------------------------------------------------------------------------
# Kernel 2: the recurrence. Only hidden-side matmuls remain on the serial path:
# one fused (B,Hp)@(Hp,2Hp) dot for z/r and one (B,Hp)@(Hp,Hp) for h_tilde.
# t_chunk timesteps are processed per grid step.
# ---------------------------------------------------------------------------
def _gru_recurrent_kernel(gx_ref, uzr_ref, uh_ref, out_ref, h_scr,
                          *, t_chunk, t_total, h_pad, unroll):
    c = pl.program_id(1)              # time-chunk index ("arbitrary" -> sequential)
    n_chunks = pl.num_programs(1)

    @pl.when(c == 0)
    def _():
        h_scr[...] = jnp.zeros_like(h_scr)

    uzr = uzr_ref[...]                # (Hp, 2Hp), MXU dtype, VMEM-resident
    uh = uh_ref[...]                  # (Hp, Hp)

    def run_chunk(masked):
        def step(i, h):
            g = gx_ref[i].astype(jnp.float32)          # (Bt, 3Hp): x-proj + bias
            zr = jax.nn.sigmoid(
                g[:, : 2 * h_pad]
                + jnp.dot(h.astype(uzr.dtype), uzr,
                          preferred_element_type=jnp.float32))
            z = zr[:, :h_pad]
            r = zr[:, h_pad:]
            h_tilde = jnp.tanh(
                g[:, 2 * h_pad:]
                + jnp.dot((r * h).astype(uh.dtype), uh,
                          preferred_element_type=jnp.float32))
            h_new = h + z * (h_tilde - h)              # == (1 - z) * h + z * h_tilde
            if masked:                                 # only emitted for the tail chunk
                h_new = jnp.where(c * t_chunk + i < t_total, h_new, h)
            return h_new

        h_scr[...] = jax.lax.fori_loop(0, t_chunk, step, h_scr[...], unroll=unroll)

    if t_total % t_chunk == 0:
        run_chunk(masked=False)
    else:
        # Pay the per-step VPU select only on the final (ragged) time chunk.
        @pl.when(c != n_chunks - 1)
        def _():
            run_chunk(masked=False)

        @pl.when(c == n_chunks - 1)
        def _():
            run_chunk(masked=True)

    @pl.when(c == n_chunks - 1)       # write output once per batch tile
    def _():
        out_ref[...] = h_scr[...].astype(out_ref.dtype)


def gru_forward(inputs, params, *, mxu_dtype=jnp.bfloat16):
    """inputs: (batch, seq, input_size) f32. Returns final hidden (batch, hidden)."""
    B, T, D = inputs.shape
    H = params["wz"].shape[1]
    f32 = jnp.float32

    n_tc, vmem_limit = _tpu_generation_info()

    H_pad = _round_up(H, 128)                       # lane-dense hidden dim
    sub_align = 16 if mxu_dtype == jnp.bfloat16 else 8   # bf16 packs 16 sublanes

    if B > 128:
        B_tile = 128
        B_pad = _round_up(B, B_tile)
    else:
        B_tile = _round_up(B, sub_align)
        B_pad = B_tile
    # v7x: make sure the "parallel" batch axis has >= 2 tiles so the 2nd TC works.
    if n_tc == 2 and B_pad // B_tile == 1 and B >= 2 * sub_align:
        B_tile = _round_up(-(-B // 2), sub_align)
        B_pad = 2 * B_tile

    # Time-chunk / unroll tuning by regime (latency-bound tiny tiles get deeper
    # chunks; big tiles cap the unroll so live ranges fit the 64-vreg file).
    work = B_tile * H_pad
    t_chunk = 32 if work <= 16 * 1024 else 8
    t_chunk = max(1, min(t_chunk, T))

    gx_bytes = jnp.dtype(mxu_dtype).itemsize
    w_bytes = jnp.dtype(mxu_dtype).itemsize

    def _recurrent_vmem(tc):
        gx_blk = 2 * tc * B_tile * 3 * H_pad * gx_bytes           # double-buffered gx
        wts = 2 * (3 * H_pad * H_pad) * w_bytes                   # worst case (2 bufs)
        return gx_blk + wts + B_tile * H_pad * 4 + (1 << 20)

    while t_chunk > 1 and _recurrent_vmem(t_chunk) > vmem_limit - 8 * 1024 * 1024:
        t_chunk = max(1, t_chunk // 2)

    T_pad = _round_up(T, t_chunk)
    n_tchunks = T_pad // t_chunk
    n_btiles = B_pad // B_tile
    unroll = t_chunk if work <= 32 * 1024 else min(4, t_chunk)

    def pad2(a, rows, cols):
        return jnp.pad(a.astype(f32),
                       ((0, rows - a.shape[0]), (0, cols - a.shape[1])))

    # Fused + padded weights. Zero padding keeps padded hidden lanes inert.
    w_x = jnp.concatenate([pad2(params["wz"], D, H_pad),
                           pad2(params["wr"], D, H_pad),
                           pad2(params["wh"], D, H_pad)], axis=1).astype(mxu_dtype)
    b_x = jnp.concatenate([pad2(params["bz"], 1, H_pad),
                           pad2(params["br"], 1, H_pad),
                           pad2(params["bh"], 1, H_pad)], axis=1)          # f32 bias
    u_zr = jnp.concatenate([pad2(params["uz"], H_pad, H_pad),
                            pad2(params["ur"], H_pad, H_pad)], axis=1).astype(mxu_dtype)
    u_h = pad2(params["uh"], H_pad, H_pad).astype(mxu_dtype)

    # (B, T, D) -> (T_pad, B_pad, D), cast to MXU dtype before padding (halves x traffic).
    x_tbd = jnp.pad(jnp.transpose(inputs, (1, 0, 2)).astype(mxu_dtype),
                    ((0, T_pad - T), (0, B_pad - B), (0, 0)))
    x_flat = x_tbd.reshape(T_pad * B_pad, D)

    rows_tile = t_chunk * B_tile                      # bounded, independent of B_pad
    n_row_tiles = (T_pad * B_pad) // rows_tile

    kernel = functools.partial(_gru_recurrent_kernel,
                               t_chunk=t_chunk, t_total=T,
                               h_pad=H_pad, unroll=unroll)

    flops = (2 * T_pad * B_pad * (H_pad * 2 * H_pad + H_pad * H_pad)
             + 10 * T_pad * B_pad * H_pad)
    cost = pl.CostEstimate(
        flops=flops,
        transcendentals=3 * T_pad * B_pad * H_pad,
        bytes_accessed=(T_pad * B_pad * 3 * H_pad * gx_bytes
                        + (u_zr.size + u_h.size) * w_bytes
                        + B_pad * H_pad * 4))

    def run(single_buffer):
        # --- hoisted input projection (parallel grid over bounded row tiles) ---
        gx_flat = pl.pallas_call(
            _input_proj_kernel,
            out_shape=jax.ShapeDtypeStruct((T_pad * B_pad, 3 * H_pad), mxu_dtype),
            grid_spec=pltpu.PrefetchScalarGridSpec(
                num_scalar_prefetch=0,
                grid=(n_row_tiles,),
                in_specs=[
                    pl.BlockSpec((rows_tile, D), lambda i: (i, 0)),
                    _const_spec((D, 3 * H_pad), lambda i: (0, 0), single_buffer),
                    _const_spec((1, 3 * H_pad), lambda i: (0, 0), single_buffer),
                ],
                out_specs=pl.BlockSpec((rows_tile, 3 * H_pad), lambda i: (i, 0)),
            ),
            compiler_params=pltpu.CompilerParams(
                dimension_semantics=("parallel",),
                vmem_limit_bytes=vmem_limit),
        )(x_flat, w_x, b_x)

        gx = gx_flat.reshape(T_pad, B_pad, 3 * H_pad)

        # --- serial recurrence ---
        out_pad = pl.pallas_call(
            kernel,
            out_shape=jax.ShapeDtypeStruct((B_pad, H_pad), f32),
            grid_spec=pltpu.PrefetchScalarGridSpec(
                num_scalar_prefetch=0,
                grid=(n_btiles, n_tchunks),
                in_specs=[
                    pl.BlockSpec((t_chunk, B_tile, 3 * H_pad),
                                 lambda bi, c: (c, bi, 0)),
                    # Constant index maps: weights DMA'd once, VMEM-resident.
                    _const_spec((H_pad, 2 * H_pad), lambda bi, c: (0, 0), single_buffer),
                    _const_spec((H_pad, H_pad), lambda bi, c: (0, 0), single_buffer),
                ],
                out_specs=pl.BlockSpec((B_tile, H_pad), lambda bi, c: (bi, 0)),
                scratch_shapes=[pltpu.VMEM((B_tile, H_pad), jnp.float32)],
            ),
            compiler_params=pltpu.CompilerParams(
                dimension_semantics=("parallel", "arbitrary"),
                vmem_limit_bytes=vmem_limit),
            cost_estimate=cost,
        )(gx, u_zr, u_h)
        return out_pad

    try:
        out = run(single_buffer=True)
        jax.block_until_ready(out)
    except Exception:
        # Fallback if this JAX build rejects pipeline_mode=pl.Buffered(1).
        out = run(single_buffer=False)

    return out[:B, :H]


def gru_reference(inputs, params):
    """Pure-JAX reference mirroring the PyTorch module (w_* has bias, u_* none)."""
    B, T, D = inputs.shape
    H = params["wz"].shape[1]
    h = jnp.zeros((B, H), jnp.float32)
    for t in range(T):
        x = inputs[:, t, :]
        z = jax.nn.sigmoid(x @ params["wz"] + params["bz"] + h @ params["uz"])
        r = jax.nn.sigmoid(x @ params["wr"] + params["br"] + h @ params["ur"])
        h_tilde = jnp.tanh(x @ params["wh"] + params["bh"] + (r * h) @ params["uh"])
        h = (1.0 - z) * h + z * h_tilde
    return h


def init_params(key, input_size, hidden_size):
    """nn.Linear-style uniform(-1/sqrt(fan_in), 1/sqrt(fan_in)) init."""
    ks = jax.random.split(key, 9)

    def u(k, shape, fan_in):
        bound = 1.0 / jnp.sqrt(float(fan_in))
        return jax.random.uniform(k, shape, jnp.float32, -bound, bound)

    D, H = input_size, hidden_size
    return {
        "wz": u(ks[0], (D, H), D), "bz": u(ks[1], (1, H), D), "uz": u(ks[2], (H, H), H),
        "wr": u(ks[3], (D, H), D), "br": u(ks[4], (1, H), D), "ur": u(ks[5], (H, H), H),
        "wh": u(ks[6], (D, H), D), "bh": u(ks[7], (1, H), D), "uh": u(ks[8], (H, H), H),
    }


if __name__ == "__main__":
    key = jax.random.PRNGKey(0)
    k_in, k_par = jax.random.split(key)

    batch, seq, input_size, hidden_size = 2, 8, 4, 32
    inputs = jax.random.normal(k_in, (batch, seq, input_size), jnp.float32)
    params = init_params(k_par, input_size, hidden_size)

    ref = gru_reference(inputs, params)

    # Strict numerical check: f32 MXU operands, f32 gx.
    out_f32 = gru_forward(inputs, params, mxu_dtype=jnp.float32)
    jax.block_until_ready(out_f32)
    assert out_f32.shape == (batch, hidden_size)
    assert jnp.allclose(out_f32, ref, atol=1e-5, rtol=1e-5), "f32 mismatch vs reference"

    # Performance configuration: bf16 MXU operands + bf16 gx/x, f32 state/gate math.
    out_bf16 = gru_forward(inputs, params, mxu_dtype=jnp.bfloat16)
    jax.block_until_ready(out_bf16)
    assert out_bf16.shape == (batch, hidden_size)
    assert jnp.allclose(out_bf16, ref, atol=2e-2, rtol=2e-2), "bf16 mismatch vs reference"

    print("KERNEL_OK")
</pallas_src>

<mosaic_0001>
module attributes {stable_mosaic.version = 11 : i64} {
  func.func @_input_proj_kernel(%arg0: i32, %arg1: memref<64x4xf32, #tpu.memory_space<vmem>>, %arg2: memref<4x384xf32, #tpu.memory_space<vmem>>, %arg3: memref<1x384xf32, #tpu.memory_space<vmem>>, %arg4: memref<64x384xf32, #tpu.memory_space<vmem>>) attributes {dimension_semantics = [#tpu.dimension_semantics<parallel>], iteration_bounds = array<i64: 1>, scalar_prefetch = 0 : i64, scratch_operands = 0 : i64, tpu.core_type = #tpu.core_type<tc>, window_params = [{transform_indices = @transform_0, window_bounds = array<i64: 64, 4>}, {pipeline_mode = #tpu.pipeline_mode<synchronous>, transform_indices = @transform_1, window_bounds = array<i64: 4, 384>}, {pipeline_mode = #tpu.pipeline_mode<synchronous>, transform_indices = @transform_2, window_bounds = array<i64: 1, 384>}, {transform_indices = @transform_3, window_bounds = array<i64: 64, 384>}]} {
    %c0 = arith.constant 0 : index
    %c0_0 = arith.constant 0 : index
    %0 = vector.load %arg1[%c0, %c0_0] : memref<64x4xf32, #tpu.memory_space<vmem>>, vector<64x4xf32>
    %c0_1 = arith.constant 0 : index
    %c0_2 = arith.constant 0 : index
    %1 = vector.load %arg2[%c0_1, %c0_2] : memref<4x384xf32, #tpu.memory_space<vmem>>, vector<4x384xf32>
    %cst = arith.constant dense<0.000000e+00> : vector<64x384xf32>
    %2 = tpu.matmul %0, %1, %cst {dimension_numbers = #tpu.dot_dimension_numbers<[1], [0], [0], [1], [0, 0, 1, 1], [], []>} : vector<64x4xf32>, vector<4x384xf32>, vector<64x384xf32> -> vector<64x384xf32>
    %c0_3 = arith.constant 0 : index
    %c0_4 = arith.constant 0 : index
    %3 = vector.load %arg3[%c0_3, %c0_4] : memref<1x384xf32, #tpu.memory_space<vmem>>, vector<1x384xf32>
    %4 = vector.broadcast %3 : vector<1x384xf32> to vector<64x384xf32>
    %5 = arith.addf %2, %4 : vector<64x384xf32>
    %c0_5 = arith.constant 0 : index
    %c0_6 = arith.constant 0 : index
    %6 = vector.load %arg4[%c0_5, %c0_6] : memref<64x384xf32, #tpu.memory_space<vmem>>, vector<64x384xf32>
    tpu.vector_store %arg4[%c0_5, %c0_6], %5 {strides = array<i32>} : memref<64x384xf32, #tpu.memory_space<vmem>>, vector<64x384xf32>,
    return
  }
  func.func @transform_0(%arg0: i32) -> (i32, i32) {
    %c0_i32 = arith.constant 0 : i32
    %c0_i32_0 = arith.constant 0 : i32
    return %arg0, %c0_i32 : i32, i32
  }
  func.func @transform_1(%arg0: i32) -> (i32, i32) {
    %c0_i32 = arith.constant 0 : i32
    %c0_i32_0 = arith.constant 0 : i32
    %c0_i32_1 = arith.constant 0 : i32
    return %c0_i32, %c0_i32_0 : i32, i32
  }
  func.func @transform_2(%arg0: i32) -> (i32, i32) {
    %c0_i32 = arith.constant 0 : i32
    %c0_i32_0 = arith.constant 0 : i32
    %c0_i32_1 = arith.constant 0 : i32
    return %c0_i32, %c0_i32_0 : i32, i32
  }
  func.func @transform_3(%arg0: i32) -> (i32, i32) {
    %c0_i32 = arith.constant 0 : i32
    %c0_i32_0 = arith.constant 0 : i32
    return %arg0, %c0_i32 : i32, i32
  }
}

module attributes {stable_mosaic.version = 11 : i64} {
  func.func @_input_proj_kernel(%arg0: i32, %arg1: memref<64x4xf32, #tpu.memory_space<vmem>>, %arg2: memref<4x384xf32, #tpu.memory_space<vmem>>, %arg3: memref<1x384xf32, #tpu.memory_space<vmem>>, %arg4: memref<64x384xf32, #tpu.memory_space<vmem>>) attributes {dimension_semantics = [#tpu.dimension_semantics<parallel>], iteration_bounds = array<i64: 1>, scalar_prefetch = 0 : i64, scratch_operands = 0 : i64, tpu.core_type = #tpu.core_type<tc>, window_params = [{transform_indices = @transform_0, window_bounds = array<i64: 64, 4>}, {pipeline_mode = #tpu.pipeline_mode<synchronous>, transform_indices = @transform_1, window_bounds = array<i64: 4, 384>}, {pipeline_mode = #tpu.pipeline_mode<synchronous>, transform_indices = @transform_2, window_bounds = array<i64: 1, 384>}, {transform_indices = @transform_3, window_bounds = array<i64: 64, 384>}]} {
    %c0 = arith.constant 0 : index
    %c0_0 = arith.constant 0 : index
    %0 = vector.load %arg1[%c0, %c0_0] : memref<64x4xf32, #tpu.memory_space<vmem>>, vector<64x4xf32>
    %c0_1 = arith.constant 0 : index
    %c0_2 = arith.constant 0 : index
    %1 = vector.load %arg2[%c0_1, %c0_2] : memref<4x384xf32, #tpu.memory_space<vmem>>, vector<4x384xf32>
    %cst = arith.constant dense<0.000000e+00> : vector<64x384xf32>
    %2 = tpu.matmul %0, %1, %cst {dimension_numbers = #tpu.dot_dimension_numbers<[1], [0], [0], [1], [0, 0, 1, 1], [], []>} : vector<64x4xf32>, vector<4x384xf32>, vector<64x384xf32> -> vector<64x384xf32>
    %c0_3 = arith.constant 0 : index
    %c0_4 = arith.constant 0 : index
    %3 = vector.load %arg3[%c0_3, %c0_4] : memref<1x384xf32, #tpu.memory_space<vmem>>, vector<1x384xf32>
    %4 = vector.broadcast %3 : vector<1x384xf32> to vector<64x384xf32>
    %5 = arith.addf %2, %4 : vector<64x384xf32>
    %c0_5 = arith.constant 0 : index
    %c0_6 = arith.constant 0 : index
    %6 = vector.load %arg4[%c0_5, %c0_6] : memref<64x384xf32, #tpu.memory_space<vmem>>, vector<64x384xf32>
    tpu.vector_store %arg4[%c0_5, %c0_6], %5 {strides = array<i32>} : memref<64x384xf32, #tpu.memory_space<vmem>>, vector<64x384xf32>,
    return
  }
  func.func @transform_0(%arg0: i32) -> (i32, i32) {
    %c0_i32 = arith.constant 0 : i32
    %c0_i32_0 = arith.constant 0 : i32
    return %arg0, %c0_i32 : i32, i32
  }
  func.func @transform_1(%arg0: i32) -> (i32, i32) {
    %c0_i32 = arith.constant 0 : i32
    %c0_i32_0 = arith.constant 0 : i32
    %c0_i32_1 = arith.constant 0 : i32
    return %c0_i32, %c0_i32_0 : i32, i32
  }
  func.func @transform_2(%arg0: i32) -> (i32, i32) {
    %c0_i32 = arith.constant 0 : i32
    %c0_i32_0 = arith.constant 0 : i32
    %c0_i32_1 = arith.constant 0 : i32
    return %c0_i32, %c0_i32_0 : i32, i32
  }
  func.func @transform_3(%arg0: i32) -> (i32, i32) {
    %c0_i32 = arith.constant 0 : i32
    %c0_i32_0 = arith.constant 0 : i32
    return %arg0, %c0_i32 : i32, i32
  }
}

</mosaic_0001>

<bundles_post_ra>
// kernel: tpu_custom_call.1
= control target key start
LH: loop header
LB: loop body
LE: loop exit
PB: predicated region body
PF: predicated region fallthrough
CT: control target
= control target key end

     0   :  { %8 = vsyncpa [#allocation3], 0  ;;  %s648_s0 = inlined_call_operand.hbm [shape: f32[64,4], index: 0, kind: input, shape index: {}]   ;;  %s649_s1 = inlined_call_operand.hbm [shape: f32[4,384], index: 1, kind: input, shape index: {}]   ;;  %s650_s2 = inlined_call_operand.hbm [shape: f32[1,384], index: 2, kind: input, shape index: {}]   ;;  %s651_s3 = inlined_call_operand.hbm [shape: f32[64,384], index: 3, kind: output, shape index: {}]  }
   0x1   :  { %9 = vsyncpa [#allocation6], 0 }
   0x2   :  { %10 = vsyncpa [#allocation4], 0  ;;  %s522_s12 = smov [#allocation5]   ;;  %s523_s14 = smov [#allocation2]  }
   0x3   :  { %s29_s13 = sshll.u32 %s522_s12, 4  ;;  %s16_s15 = sshll.u32 %s523_s14, 4  ;;  %s30_s13 = int_to_ptr.vmem [resolvable:$true] %s29_s13  ;;  %s551_s15 = int_to_ptr.vmem [resolvable:$true] %s16_s15 }
   0x4   :  { %s428_s18 = scalar_lea.hbm %s649_s1, 192 }
   0x5   :  { %p429_p0 = scmp.ne.s32.totalorder %s649_s1, %s428_s18  ;;  %p432_p1 = scmp.lt.u32.totalorder %s428_s18, %s649_s1 }
   0x7   :  { %p434_p2 = pnand %p432_p1, %p429_p0 }
   0x9   :  { %437 = shalt.err (!%p434_p2)
}
   0xa   :  { %s438_s23 = scalar_lea.vmem %s30_s13, 192  ;;  %p443_p4 = scmp.lt.s32.totalorder %s30_s13, %s30_s13 }
   0xb   :  { %p439_p3 = scmp.ne.s32.totalorder %s30_s13, %s438_s23  ;;  %p444_p5 = scmp.lt.s32.totalorder %s438_s23, %s438_s23 }
   0xd   :  { %p445_p6 = por %p444_p5, %p443_p4 }
   0xf   :  { %p446_p7 = pnand %p445_p6, %p439_p3 }
  0x11   :  { %449 = shalt.err (!%p446_p7)
}
  0x12   :  { %32 = dma.hbm_to_vmem [thread:$0]  %s649_s1, 192, %s30_s13, [#allocation6]  }
  0x13   :  { %s450_s28 = scalar_lea.hbm %s648_s0, 1024 }
  0x14   :  { %p451_p8 = scmp.ne.s32.totalorder %s648_s0, %s450_s28  ;;  %p454_p9 = scmp.lt.u32.totalorder %s450_s28, %s648_s0 }
  0x16   :  { %p456_p10 = pnand %p454_p9, %p451_p8 }
  0x18   :  { %459 = shalt.err (!%p456_p10)
}
  0x19   :  { %s460_s6 = scalar_lea.vmem %s551_s15, 1024  ;;  %p465_p12 = scmp.lt.s32.totalorder %s551_s15, %s551_s15 }
  0x1a   :  { %p461_p11 = scmp.ne.s32.totalorder %s551_s15, %s460_s6  ;;  %p466_p13 = scmp.lt.s32.totalorder %s460_s6, %s460_s6 }
  0x1c   :  { %p467_p0 = por %p466_p13, %p465_p12 }
  0x1e   :  { %p468_p1 = pnand %p467_p0, %p461_p11 }
  0x20   :  { %471 = shalt.err (!%p468_p1)
}
  0x21   :  { %s524_s1 = smov 128   ;;  %s525_s7 = smov 8  }
  0x22   :  { %22 = dma.hbm_to_vmem [thread:$0]  %s648_s0, 1024, %s551_s15, [#allocation3], %s524_s1, %s524_s1, %s525_s7  }
  0x23   :  { %s526_s10 = smov [#allocation7]   ;;  %s472_s14 = scalar_lea.hbm %s650_s2, 48 }
  0x24   :  { %s39_s11 = sshll.u32 %s526_s10, 4  ;;  %p473_p2 = scmp.ne.s32.totalorder %s650_s2, %s472_s14  ;;  %s40_s11 = int_to_ptr.vmem [resolvable:$true] %s39_s11 }
  0x25   :  { %p476_p3 = scmp.lt.u32.totalorder %s472_s14, %s650_s2 }
  0x27   :  { %p478_p4 = pnand %p476_p3, %p473_p2 }
  0x29   :  { %481 = shalt.err (!%p478_p4)
}
  0x2a   :  { %s482_s20 = scalar_lea.vmem %s40_s11, 48  ;;  %s486_s0 = scalar_lea.vmem %s40_s11, 64 }
  0x2b   :  { %p483_p5 = scmp.ne.s32.totalorder %s40_s11, %s482_s20  ;;  %p487_p6 = scmp.lt.s32.totalorder %s40_s11, %s40_s11 }
  0x2c   :  { %p488_p7 = scmp.lt.s32.totalorder %s486_s0, %s482_s20 }
  0x2e   :  { %p489_p8 = por %p488_p7, %p487_p6 }
  0x30   :  { %p490_p9 = pnand %p489_p8, %p483_p5 }
  0x32   :  { %493 = shalt.err (!%p490_p9)
}
  0x33   :  { %42 = dma.hbm_to_vmem [thread:$0]  %s650_s2, 48, %s40_s11, [#allocation6]  }
  0x34   :  { %516 = dma.done.wait [#allocation3], 1024  }
  0x35   :  { %517 = vsyncadd [#allocation3], 4294966272 }
  0x36   :  { %518 = dma.done.wait [#allocation6], 240  }
  0x37   :  { %519 = vsyncadd [#allocation6], 4294967056  ;;  %v527_v0 = vmov 0.0   ;;  %v60_v1 = vld [vmem:[#allocation5] sm:$0xff]  ;;  %vm107_vm0 = vcmask 1043456   ;;  %vm82_vm1 = vcmask 31744   ;;  %v64_v12 = vlaneseq }
  0x38   :  { %178 = vmatprep.mubr.f32.mxu0 %v527_v0  ;;  %214 = vmatprep.mubr.f32.mxu1 %v527_v0  ;;  %v81_v2 = vcombine.high %v60_v1, %v60_v1  ;;  %v52_v3 = vld [vmem:[#allocation2] sm:$0xff]  ;;  %v58_v4 = vld [vmem:[#allocation2 + $0x30] sm:$0xff]  ;;  %v61_v5 = vld [vmem:[#allocation5 + $0x8] sm:$0xf]  ;;  %s528_s2 = smov [#allocation8]  }
  0x39   :  { %v53_v6 = vld [vmem:[#allocation2 + $0x8] sm:$0xff]  ;;  %v59_v7 = vld [vmem:[#allocation2 + $0x38] sm:$0xff]  ;;  %v54_v8 = vld [vmem:[#allocation2 + $0x10] sm:$0xff]  ;;  %v65_v13 = vshrl.u32 %v64_v12, 7  ;;  %s361_s22 = sshll.u32 %s528_s2, 4  ;;  %s362_s22 = int_to_ptr.vmem [resolvable:$true] %s361_s22 }
  0x3a   :  { %374 = vmatprep.subr.msk.mxu0 %vm107_vm0, %v81_v2  ;;  %416 = vmatprep.subr.msk.mxu1 %vm107_vm0, %v81_v2  ;;  %v55_v9 = vld [vmem:[#allocation2 + $0x18] sm:$0xff]  ;;  %v56_v10 = vld [vmem:[#allocation2 + $0x20] sm:$0xff]  ;;  %v57_v11 = vld [vmem:[#allocation2 + $0x28] sm:$0xff]  ;;  %s494_s23 = scalar_lea.vmem %s362_s22, 3072  ;;  %p499_p11 = scmp.lt.s32.totalorder %s362_s22, %s362_s22 }
  0x3b   :  { %375 = vmatpush1.msk.msra.mxu0 %vm107_vm0, %v60_v1  ;;  %417 = vmatpush1.msk.msra.mxu1 %vm107_vm0, %v60_v1  ;;  %v66_v14 = vsub.s32 0, %v65_v13  ;;  %v62_v15 = vld [vmem:[#allocation7] sm:$0x7]  ;;  %v70_v16 = vsub.s32 1, %v65_v13  ;;  %v74_v25 = vsub.s32 2, %v65_v13  ;;  %p495_p10 = scmp.ne.s32.totalorder %s362_s22, %s494_s23  ;;  %p500_p12 = scmp.lt.s32.totalorder %s494_s23, %s494_s23 }
  0x3c   :  { %376 = vmatmul.mubr.msk.f32.vlgmr.msra.gmra.mrb[0].mxu0 %vm82_vm1, %v52_v3  ;;  %382 = vmatmul.mubr.msk.f32.vlgmr.msra.gmra.mrb[0].mxu1 %vm82_vm1, %v58_v4 }
  0x3d   :  { %402 = vmatprep.subr.msk.mxu1 %vm107_vm0, %v61_v5  ;;  %184 = vmatprep.mubr.f32.mxu0 %v527_v0  ;;  %v616_v17 = vrot.slane %v62_v15, %v66_v14  ;;  %v618_v18 = vrot.slane %v62_v15, %v70_v16  ;;  %v75_v34 = vrot.slane %v62_v15, %v74_v25  ;;  %p501_p13 = por %p500_p12, %p499_p11 }
  0x3e   :  { %403 = vmatpush3.msk.msra.mxu1 %vm107_vm0, %v61_v5  ;;  %220 = vmatprep.mubr.f32.mxu1 %v527_v0 }
  0x3f   :  { %p502_p0 = pnand %p501_p13, %p495_p10 }
  0x40   :  { %377 = vmatmul.mubr.msk.f32.gmra.mrb[2].mxu0 %vm82_vm1, %v53_v6  ;;  %383 = vmatmul.mubr.msk.f32.gmra.mrb[2].mxu1 %vm82_vm1, %v59_v7 }
  0x41   :  { %190 = vmatprep.mubr.f32.mxu0 %v527_v0  ;;  %404 = vmatprep.mubr.msk.f32.mxu1 %vm82_vm1, %v52_v3 }
  0x44   :  { %378 = vmatmul.mubr.msk.f32.gmra.mrb[4].mxu0 %vm82_vm1, %v54_v8  ;;  %405 = vmatmul.mubr.msk.f32.vlgmr.msra.gmra.mrb[4].mxu1 %vm82_vm1, %v53_v6 }
  0x45   :  { %196 = vmatprep.mubr.f32.mxu0 %v527_v0  ;;  %407 = vmatprep.mubr.msk.f32.mxu1 %vm82_vm1, %v54_v8 }
  0x48   :  { %379 = vmatmul.mubr.msk.f32.gmra.mrb[6].mxu0 %vm82_vm1, %v55_v9  ;;  %408 = vmatmul.mubr.msk.f32.gmra.mrb[6].mxu1 %vm82_vm1, %v55_v9 }
  0x49   :  { %202 = vmatprep.mubr.f32.mxu0 %v527_v0  ;;  %410 = vmatprep.mubr.msk.f32.mxu1 %vm82_vm1, %v56_v10 }
  0x4c   :  { %380 = vmatmul.mubr.msk.f32.gmra.mrb[8].mxu0 %vm82_vm1, %v56_v10  ;;  %411 = vmatmul.mubr.msk.f32.gmra.mrb[8].mxu1 %vm82_vm1, %v57_v11 }
  0x4d   :  { %208 = vmatprep.mubr.f32.mxu0 %v527_v0  ;;  %413 = vmatprep.mubr.msk.f32.mxu1 %vm82_vm1, %v58_v4 }
  0x50   :  { %381 = vmatmul.mubr.msk.f32.gmra.mrb[10].mxu0 %vm82_vm1, %v57_v11  ;;  %414 = vmatmul.mubr.msk.f32.gmra.mrb[10].mxu1 %vm82_vm1, %v59_v7 }
 0x10f   :  { %v180_v19 = vpop.f32.mrb[0].mxu0  ;;  %v216_v20 = vpop.f32.mrb[0].mxu1 }
 0x110   :  { %v181_v21 = vadd.f32 %v180_v19, %v616_v17  ;;  %v217_v22 = vadd.f32 %v216_v20, %v616_v17  ;;  %v182_v23 = vpop.f32.mrb[1].mxu0  ;;  %v218_v24 = vpop.f32.mrb[1].mxu1 }
 0x111   :  { %v183_v26 = vadd.f32 %v182_v23, %v618_v18  ;;  %v219_v27 = vadd.f32 %v218_v24, %v618_v18 }
 0x112   :  { %332 = vst [vmem:[#allocation8] sm:$0xff] %v181_v21  ;;  %350 = vst [vmem:[#allocation8 + $0x90] sm:$0xff] %v217_v22 }
 0x113   :  { %333 = vst [vmem:[#allocation8 + $0x8] sm:$0xff] %v183_v26  ;;  %351 = vst [vmem:[#allocation8 + $0x98] sm:$0xff] %v219_v27  ;;  %v186_v28 = vpop.f32.mrb[2].mxu0  ;;  %v222_v29 = vpop.f32.mrb[2].mxu1 }
 0x114   :  { %v187_v30 = vadd.f32 %v186_v28, %v616_v17  ;;  %v223_v31 = vadd.f32 %v222_v29, %v616_v17  ;;  %v188_v32 = vpop.f32.mrb[3].mxu0  ;;  %v224_v33 = vpop.f32.mrb[3].mxu1 }
 0x115   :  { %v189_v35 = vadd.f32 %v188_v32, %v618_v18  ;;  %v225_v36 = vadd.f32 %v224_v33, %v618_v18 }
 0x116   :  { %335 = vst [vmem:[#allocation8 + $0x18] sm:$0xff] %v187_v30  ;;  %353 = vst [vmem:[#allocation8 + $0xa8] sm:$0xff] %v223_v31 }
 0x117   :  { %336 = vst [vmem:[#allocation8 + $0x20] sm:$0xff] %v189_v35  ;;  %354 = vst [vmem:[#allocation8 + $0xb0] sm:$0xff] %v225_v36  ;;  %v192_v37 = vpop.f32.mrb[4].mxu0  ;;  %v406_v38 = vpop.f32.mrb[4].mxu1 }
 0x118   :  { %v193_v39 = vadd.f32 %v192_v37, %v616_v17  ;;  %v299_v40 = vadd.f32 %v406_v38, %v75_v34  ;;  %v194_v41 = vpop.f32.mrb[5].mxu0  ;;  %v293_v42 = vpop.f32.mrb[5].mxu1 }
 0x119   :  { %v195_v43 = vadd.f32 %v194_v41, %v618_v18  ;;  %v294_v44 = vadd.f32 %v293_v42, %v75_v34 }
 0x11a   :  { %338 = vst [vmem:[#allocation8 + $0x30] sm:$0xff] %v193_v39  ;;  %337 = vst [vmem:[#allocation8 + $0x28] sm:$0xff] %v299_v40 }
 0x11b   :  { %339 = vst [vmem:[#allocation8 + $0x38] sm:$0xff] %v195_v43  ;;  %334 = vst [vmem:[#allocation8 + $0x10] sm:$0xff] %v294_v44  ;;  %v198_v45 = vpop.f32.mrb[6].mxu0  ;;  %v409_v46 = vpop.f32.mrb[6].mxu1 }
 0x11c   :  { %v199_v47 = vadd.f32 %v198_v45, %v616_v17  ;;  %v309_v48 = vadd.f32 %v409_v46, %v75_v34  ;;  %v200_v49 = vpop.f32.mrb[7].mxu0  ;;  %v303_v50 = vpop.f32.mrb[7].mxu1 }
 0x11d   :  { %v201_v51 = vadd.f32 %v200_v49, %v618_v18  ;;  %v304_v52 = vadd.f32 %v303_v50, %v75_v34 }
 0x11e   :  { %341 = vst [vmem:[#allocation8 + $0x48] sm:$0xff] %v199_v47  ;;  %343 = vst [vmem:[#allocation8 + $0x58] sm:$0xff] %v309_v48 }
 0x11f   :  { %342 = vst [vmem:[#allocation8 + $0x50] sm:$0xff] %v201_v51  ;;  %340 = vst [vmem:[#allocation8 + $0x40] sm:$0xff] %v304_v52  ;;  %v204_v53 = vpop.f32.mrb[8].mxu0  ;;  %v412_v54 = vpop.f32.mrb[8].mxu1 }
 0x120   :  { %v205_v55 = vadd.f32 %v204_v53, %v616_v17  ;;  %v319_v56 = vadd.f32 %v412_v54, %v75_v34  ;;  %v206_v57 = vpop.f32.mrb[9].mxu0  ;;  %v313_v58 = vpop.f32.mrb[9].mxu1 }
 0x121   :  { %v207_v59 = vadd.f32 %v206_v57, %v618_v18  ;;  %v314_v60 = vadd.f32 %v313_v58, %v75_v34 }
 0x122   :  { %344 = vst [vmem:[#allocation8 + $0x60] sm:$0xff] %v205_v55  ;;  %349 = vst [vmem:[#allocation8 + $0x88] sm:$0xff] %v319_v56 }
 0x123   :  { %345 = vst [vmem:[#allocation8 + $0x68] sm:$0xff] %v207_v59  ;;  %346 = vst [vmem:[#allocation8 + $0x70] sm:$0xff] %v314_v60  ;;  %v210_v61 = vpop.f32.mrb[10].mxu0  ;;  %v415_v62 = vpop.f32.mrb[10].mxu1 }
 0x124   :  { %v211_v63 = vadd.f32 %v210_v61, %v616_v17  ;;  %v329_v0 = vadd.f32 %v415_v62, %v75_v34  ;;  %v212_v1 = vpop.f32.mrb[11].mxu0  ;;  %v323_v2 = vpop.f32.mrb[11].mxu1 }
 0x125   :  { %v213_v3 = vadd.f32 %v212_v1, %v618_v18  ;;  %v324_v4 = vadd.f32 %v323_v2, %v75_v34 }
 0x126   :  { %347 = vst [vmem:[#allocation8 + $0x78] sm:$0xff] %v211_v63  ;;  %355 = vst [vmem:[#allocation8 + $0xb8] sm:$0xff] %v329_v0 }
 0x127   :  { %348 = vst [vmem:[#allocation8 + $0x80] sm:$0xff] %v213_v3  ;;  %352 = vst [vmem:[#allocation8 + $0xa0] sm:$0xff] %v324_v4 }
 0x128   :  { %505 = shalt.err (!%p502_p0)
}
 0x129   :  { %s506_s26 = scalar_lea.hbm %s651_s3, 3072 }
 0x12a   :  { %p507_p1 = scmp.ne.s32.totalorder %s651_s3, %s506_s26  ;;  %p510_p2 = scmp.lt.u32.totalorder %s506_s26, %s651_s3 }
 0x12c   :  { %p512_p3 = pnand %p510_p2, %p507_p1 }
 0x12e   :  { %515 = shalt.err (!%p512_p3)
}
 0x12f   :  { %s529_s4 = smov 384   ;;  %s530_s5 = smov 24  }
 0x130   :  { %367 = dma.vmem_to_hbm [thread:$0]  %s362_s22, 3072, %s651_s3, [#allocation4], %s529_s4, %s529_s4, %s530_s5  }
 0x131   :  { %520 = dma.done.wait [#allocation4], 3072  }
 0x132   :  { %521 = vsyncadd [#allocation4], 4294964224 }
 0x133   :  { %371 = vsyncpa [#allocation3], 1 }
 0x134   :  { %372 = vsyncpa [#allocation6], 1 }
 0x135   :  { %373 = vsyncpa [#allocation4], 1 }

// kernel: tpu_custom_call.1
= control target key start
LH: loop header
LB: loop body
LE: loop exit
PB: predicated region body
PF: predicated region fallthrough
CT: control target
= control target key end

     0   :  { %8 = vsyncpa [#allocation3], 0  ;;  %s648_s0 = inlined_call_operand.hbm [shape: f32[64,4], index: 0, kind: input, shape index: {}]   ;;  %s649_s1 = inlined_call_operand.hbm [shape: f32[4,384], index: 1, kind: input, shape index: {}]   ;;  %s650_s2 = inlined_call_operand.hbm [shape: f32[1,384], index: 2, kind: input, shape index: {}]   ;;  %s651_s3 = inlined_call_operand.hbm [shape: f32[64,384], index: 3, kind: output, shape index: {}]  }
   0x1   :  { %9 = vsyncpa [#allocation6], 0 }
   0x2   :  { %10 = vsyncpa [#allocation4], 0  ;;  %s522_s12 = smov [#allocation5]   ;;  %s523_s14 = smov [#allocation2]  }
   0x3   :  { %s29_s13 = sshll.u32 %s522_s12, 4  ;;  %s16_s15 = sshll.u32 %s523_s14, 4  ;;  %s30_s13 = int_to_ptr.vmem [resolvable:$true] %s29_s13  ;;  %s551_s15 = int_to_ptr.vmem [resolvable:$true] %s16_s15 }
   0x4   :  { %s428_s18 = scalar_lea.hbm %s649_s1, 192 }
   0x5   :  { %p429_p0 = scmp.ne.s32.totalorder %s649_s1, %s428_s18  ;;  %p432_p1 = scmp.lt.u32.totalorder %s428_s18, %s649_s1 }
   0x7   :  { %p434_p2 = pnand %p432_p1, %p429_p0 }
   0x9   :  { %437 = shalt.err (!%p434_p2)
}
   0xa   :  { %s438_s23 = scalar_lea.vmem %s30_s13, 192  ;;  %p443_p4 = scmp.lt.s32.totalorder %s30_s13, %s30_s13 }
   0xb   :  { %p439_p3 = scmp.ne.s32.totalorder %s30_s13, %s438_s23  ;;  %p444_p5 = scmp.lt.s32.totalorder %s438_s23, %s438_s23 }
   0xd   :  { %p445_p6 = por %p444_p5, %p443_p4 }
   0xf   :  { %p446_p7 = pnand %p445_p6, %p439_p3 }
  0x11   :  { %449 = shalt.err (!%p446_p7)
}
  0x12   :  { %32 = dma.hbm_to_vmem [thread:$0]  %s649_s1, 192, %s30_s13, [#allocation6]  }
  0x13   :  { %s450_s28 = scalar_lea.hbm %s648_s0, 1024 }
  0x14   :  { %p451_p8 = scmp.ne.s32.totalorder %s648_s0, %s450_s28  ;;  %p454_p9 = scmp.lt.u32.totalorder %s450_s28, %s648_s0 }
  0x16   :  { %p456_p10 = pnand %p454_p9, %p451_p8 }
  0x18   :  { %459 = shalt.err (!%p456_p10)
}
  0x19   :  { %s460_s6 = scalar_lea.vmem %s551_s15, 1024  ;;  %p465_p12 = scmp.lt.s32.totalorder %s551_s15, %s551_s15 }
  0x1a   :  { %p461_p11 = scmp.ne.s32.totalorder %s551_s15, %s460_s6  ;;  %p466_p13 = scmp.lt.s32.totalorder %s460_s6, %s460_s6 }
  0x1c   :  { %p467_p0 = por %p466_p13, %p465_p12 }
  0x1e   :  { %p468_p1 = pnand %p467_p0, %p461_p11 }
  0x20   :  { %471 = shalt.err (!%p468_p1)
}
  0x21   :  { %s524_s1 = smov 128   ;;  %s525_s7 = smov 8  }
  0x22   :  { %22 = dma.hbm_to_vmem [thread:$0]  %s648_s0, 1024, %s551_s15, [#allocation3], %s524_s1, %s524_s1, %s525_s7  }
  0x23   :  { %s526_s10 = smov [#allocation7]   ;;  %s472_s14 = scalar_lea.hbm %s650_s2, 48 }
  0x24   :  { %s39_s11 = sshll.u32 %s526_s10, 4  ;;  %p473_p2 = scmp.ne.s32.totalorder %s650_s2, %s472_s14  ;;  %s40_s11 = int_to_ptr.vmem [resolvable:$true] %s39_s11 }
  0x25   :  { %p476_p3 = scmp.lt.u32.totalorder %s472_s14, %s650_s2 }
  0x27   :  { %p478_p4 = pnand %p476_p3, %p473_p2 }
  0x29   :  { %481 = shalt.err (!%p478_p4)
}
  0x2a   :  { %s482_s20 = scalar_lea.vmem %s40_s11, 48  ;;  %s486_s0 = scalar_lea.vmem %s40_s11, 64 }
  0x2b   :  { %p483_p5 = scmp.ne.s32.totalorder %s40_s11, %s482_s20  ;;  %p487_p6 = scmp.lt.s32.totalorder %s40_s11, %s40_s11 }
  0x2c   :  { %p488_p7 = scmp.lt.s32.totalorder %s486_s0, %s482_s20 }
  0x2e   :  { %p489_p8 = por %p488_p7, %p487_p6 }
  0x30   :  { %p490_p9 = pnand %p489_p8, %p483_p5 }
  0x32   :  { %493 = shalt.err (!%p490_p9)
}
  0x33   :  { %42 = dma.hbm_to_vmem [thread:$0]  %s650_s2, 48, %s40_s11, [#allocation6]  }
  0x34   :  { %516 = dma.done.wait [#allocation3], 1024  }
  0x35   :  { %517 = vsyncadd [#allocation3], 4294966272 }
  0x36   :  { %518 = dma.done.wait [#allocation6], 240  }
  0x37   :  { %519 = vsyncadd [#allocation6], 4294967056  ;;  %v527_v0 = vmov 0.0   ;;  %v60_v1 = vld [vmem:[#allocation5] sm:$0xff]  ;;  %vm107_vm0 = vcmask 1043456   ;;  %vm82_vm1 = vcmask 31744   ;;  %v64_v12 = vlaneseq }
  0x38   :  { %178 = vmatprep.mubr.f32.mxu0 %v527_v0  ;;  %214 = vmatprep.mubr.f32.mxu1 %v527_v0  ;;  %v81_v2 = vcombine.high %v60_v1, %v60_v1  ;;  %v52_v3 = vld [vmem:[#allocation2] sm:$0xff]  ;;  %v58_v4 = vld [vmem:[#allocation2 + $0x30] sm:$0xff]  ;;  %v61_v5 = vld [vmem:[#allocation5 + $0x8] sm:$0xf]  ;;  %s528_s2 = smov [#allocation8]  }
  0x39   :  { %v53_v6 = vld [vmem:[#allocation2 + $0x8] sm:$0xff]  ;;  %v59_v7 = vld [vmem:[#allocation2 + $0x38] sm:$0xff]  ;;  %v54_v8 = vld [vmem:[#allocation2 + $0x10] sm:$0xff]  ;;  %v65_v13 = vshrl.u32 %v64_v12, 7  ;;  %s361_s22 = sshll.u32 %s528_s2, 4  ;;  %s362_s22 = int_to_ptr.vmem [resolvable:$true] %s361_s22 }
  0x3a   :  { %374 = vmatprep.subr.msk.mxu0 %vm107_vm0, %v81_v2  ;;  %416 = vmatprep.subr.msk.mxu1 %vm107_vm0, %v81_v2  ;;  %v55_v9 = vld [vmem:[#allocation2 + $0x18] sm:$0xff]  ;;  %v56_v10 = vld [vmem:[#allocation2 + $0x20] sm:$0xff]  ;;  %v57_v11 = vld [vmem:[#allocation2 + $0x28] sm:$0xff]  ;;  %s494_s23 = scalar_lea.vmem %s362_s22, 3072  ;;  %p499_p11 = scmp.lt.s32.totalorder %s362_s22, %s362_s22 }
  0x3b   :  { %375 = vmatpush1.msk.msra.mxu0 %vm107_vm0, %v60_v1  ;;  %417 = vmatpush1.msk.msra.mxu1 %vm107_vm0, %v60_v1  ;;  %v66_v14 = vsub.s32 0, %v65_v13  ;;  %v62_v15 = vld [vmem:[#allocation7] sm:$0x7]  ;;  %v70_v16 = vsub.s32 1, %v65_v13  ;;  %v74_v25 = vsub.s32 2, %v65_v13  ;;  %p495_p10 = scmp.ne.s32.totalorder %s362_s22, %s494_s23  ;;  %p500_p12 = scmp.lt.s32.totalorder %s494_s23, %s494_s23 }
  0x3c   :  { %376 = vmatmul.mubr.msk.f32.vlgmr.msra.gmra.mrb[0].mxu0 %vm82_vm1, %v52_v3  ;;  %382 = vmatmul.mubr.msk.f32.vlgmr.msra.gmra.mrb[0].mxu1 %vm82_vm1, %v58_v4 }
  0x3d   :  { %402 = vmatprep.subr.msk.mxu1 %vm107_vm0, %v61_v5  ;;  %184 = vmatprep.mubr.f32.mxu0 %v527_v0  ;;  %v616_v17 = vrot.slane %v62_v15, %v66_v14  ;;  %v618_v18 = vrot.slane %v62_v15, %v70_v16  ;;  %v75_v34 = vrot.slane %v62_v15, %v74_v25  ;;  %p501_p13 = por %p500_p12, %p499_p11 }
  0x3e   :  { %403 = vmatpush3.msk.msra.mxu1 %vm107_vm0, %v61_v5  ;;  %220 = vmatprep.mubr.f32.mxu1 %v527_v0 }
  0x3f   :  { %p502_p0 = pnand %p501_p13, %p495_p10 }
  0x40   :  { %377 = vmatmul.mubr.msk.f32.gmra.mrb[2].mxu0 %vm82_vm1, %v53_v6  ;;  %383 = vmatmul.mubr.msk.f32.gmra.mrb[2].mxu1 %vm82_vm1, %v59_v7 }
  0x41   :  { %190 = vmatprep.mubr.f32.mxu0 %v527_v0  ;;  %404 = vmatprep.mubr.msk.f32.mxu1 %vm82_vm1, %v52_v3 }
  0x44   :  { %378 = vmatmul.mubr.msk.f32.gmra.mrb[4].mxu0 %vm82_vm1, %v54_v8  ;;  %405 = vmatmul.mubr.msk.f32.vlgmr.msra.gmra.mrb[4].mxu1 %vm82_vm1, %v53_v6 }
  0x45   :  { %196 = vmatprep.mubr.f32.mxu0 %v527_v0  ;;  %407 = vmatprep.mubr.msk.f32.mxu1 %vm82_vm1, %v54_v8 }
  0x48   :  { %379 = vmatmul.mubr.msk.f32.gmra.mrb[6].mxu0 %vm82_vm1, %v55_v9  ;;  %408 = vmatmul.mubr.msk.f32.gmra.mrb[6].mxu1 %vm82_vm1, %v55_v9 }
  0x49   :  { %202 = vmatprep.mubr.f32.mxu0 %v527_v0  ;;  %410 = vmatprep.mubr.msk.f32.mxu1 %vm82_vm1, %v56_v10 }
  0x4c   :  { %380 = vmatmul.mubr.msk.f32.gmra.mrb[8].mxu0 %vm82_vm1, %v56_v10  ;;  %411 = vmatmul.mubr.msk.f32.gmra.mrb[8].mxu1 %vm82_vm1, %v57_v11 }
  0x4d   :  { %208 = vmatprep.mubr.f32.mxu0 %v527_v0  ;;  %413 = vmatprep.mubr.msk.f32.mxu1 %vm82_vm1, %v58_v4 }
  0x50   :  { %381 = vmatmul.mubr.msk.f32.gmra.mrb[10].mxu0 %vm82_vm1, %v57_v11  ;;  %414 = vmatmul.mubr.msk.f32.gmra.mrb[10].mxu1 %vm82_vm1, %v59_v7 }
 0x10f   :  { %v180_v19 = vpop.f32.mrb[0].mxu0  ;;  %v216_v20 = vpop.f32.mrb[0].mxu1 }
 0x110   :  { %v181_v21 = vadd.f32 %v180_v19, %v616_v17  ;;  %v217_v22 = vadd.f32 %v216_v20, %v616_v17  ;;  %v182_v23 = vpop.f32.mrb[1].mxu0  ;;  %v218_v24 = vpop.f32.mrb[1].mxu1 }
 0x111   :  { %v183_v26 = vadd.f32 %v182_v23, %v618_v18  ;;  %v219_v27 = vadd.f32 %v218_v24, %v618_v18 }
 0x112   :  { %332 = vst [vmem:[#allocation8] sm:$0xff] %v181_v21  ;;  %350 = vst [vmem:[#allocation8 + $0x90] sm:$0xff] %v217_v22 }
 0x113   :  { %333 = vst [vmem:[#allocation8 + $0x8] sm:$0xff] %v183_v26  ;;  %351 = vst [vmem:[#allocation8 + $0x98] sm:$0xff] %v219_v27  ;;  %v186_v28 = vpop.f32.mrb[2].mxu0  ;;  %v222_v29 = vpop.f32.mrb[2].mxu1 }
 0x114   :  { %v187_v30 = vadd.f32 %v186_v28, %v616_v17  ;;  %v223_v31 = vadd.f32 %v222_v29, %v616_v17  ;;  %v188_v32 = vpop.f32.mrb[3].mxu0  ;;  %v224_v33 = vpop.f32.mrb[3].mxu1 }
 0x115   :  { %v189_v35 = vadd.f32 %v188_v32, %v618_v18  ;;  %v225_v36 = vadd.f32 %v224_v33, %v618_v18 }
 0x116   :  { %335 = vst [vmem:[#allocation8 + $0x18] sm:$0xff] %v187_v30  ;;  %353 = vst [vmem:[#allocation8 + $0xa8] sm:$0xff] %v223_v31 }
 0x117   :  { %336 = vst [vmem:[#allocation8 + $0x20] sm:$0xff] %v189_v35  ;;  %354 = vst [vmem:[#allocation8 + $0xb0] sm:$0xff] %v225_v36  ;;  %v192_v37 = vpop.f32.mrb[4].mxu0  ;;  %v406_v38 = vpop.f32.mrb[4].mxu1 }
 0x118   :  { %v193_v39 = vadd.f32 %v192_v37, %v616_v17  ;;  %v299_v40 = vadd.f32 %v406_v38, %v75_v34  ;;  %v194_v41 = vpop.f32.mrb[5].mxu0  ;;  %v293_v42 = vpop.f32.mrb[5].mxu1 }
 0x119   :  { %v195_v43 = vadd.f32 %v194_v41, %v618_v18  ;;  %v294_v44 = vadd.f32 %v293_v42, %v75_v34 }
 0x11a   :  { %338 = vst [vmem:[#allocation8 + $0x30] sm:$0xff] %v193_v39  ;;  %337 = vst [vmem:[#allocation8 + $0x28] sm:$0xff] %v299_v40 }
 0x11b   :  { %339 = vst [vmem:[#allocation8 + $0x38] sm:$0xff] %v195_v43  ;;  %334 = vst [vmem:[#allocation8 + $0x10] sm:$0xff] %v294_v44  ;;  %v198_v45 = vpop.f32.mrb[6].mxu0  ;;  %v409_v46 = vpop.f32.mrb[6].mxu1 }
 0x11c   :  { %v199_v47 = vadd.f32 %v198_v45, %v616_v17  ;;  %v309_v48 = vadd.f32 %v409_v46, %v75_v34  ;;  %v200_v49 = vpop.f32.mrb[7].mxu0  ;;  %v303_v50 = vpop.f32.mrb[7].mxu1 }
 0x11d   :  { %v201_v51 = vadd.f32 %v200_v49, %v618_v18  ;;  %v304_v52 = vadd.f32 %v303_v50, %v75_v34 }
 0x11e   :  { %341 = vst [vmem:[#allocation8 + $0x48] sm:$0xff] %v199_v47  ;;  %343 = vst [vmem:[#allocation8 + $0x58] sm:$0xff] %v309_v48 }
 0x11f   :  { %342 = vst [vmem:[#allocation8 + $0x50] sm:$0xff] %v201_v51  ;;  %340 = vst [vmem:[#allocation8 + $0x40] sm:$0xff] %v304_v52  ;;  %v204_v53 = vpop.f32.mrb[8].mxu0  ;;  %v412_v54 = vpop.f32.mrb[8].mxu1 }
 0x120   :  { %v205_v55 = vadd.f32 %v204_v53, %v616_v17  ;;  %v319_v56 = vadd.f32 %v412_v54, %v75_v34  ;;  %v206_v57 = vpop.f32.mrb[9].mxu0  ;;  %v313_v58 = vpop.f32.mrb[9].mxu1 }
 0x121   :  { %v207_v59 = vadd.f32 %v206_v57, %v618_v18  ;;  %v314_v60 = vadd.f32 %v313_v58, %v75_v34 }
 0x122   :  { %344 = vst [vmem:[#allocation8 + $0x60] sm:$0xff] %v205_v55  ;;  %349 = vst [vmem:[#allocation8 + $0x88] sm:$0xff] %v319_v56 }
 0x123   :  { %345 = vst [vmem:[#allocation8 + $0x68] sm:$0xff] %v207_v59  ;;  %346 = vst [vmem:[#allocation8 + $0x70] sm:$0xff] %v314_v60  ;;  %v210_v61 = vpop.f32.mrb[10].mxu0  ;;  %v415_v62 = vpop.f32.mrb[10].mxu1 }
 0x124   :  { %v211_v63 = vadd.f32 %v210_v61, %v616_v17  ;;  %v329_v0 = vadd.f32 %v415_v62, %v75_v34  ;;  %v212_v1 = vpop.f32.mrb[11].mxu0  ;;  %v323_v2 = vpop.f32.mrb[11].mxu1 }
 0x125   :  { %v213_v3 = vadd.f32 %v212_v1, %v618_v18  ;;  %v324_v4 = vadd.f32 %v323_v2, %v75_v34 }
 0x126   :  { %347 = vst [vmem:[#allocation8 + $0x78] sm:$0xff] %v211_v63  ;;  %355 = vst [vmem:[#allocation8 + $0xb8] sm:$0xff] %v329_v0 }
 0x127   :  { %348 = vst [vmem:[#allocation8 + $0x80] sm:$0xff] %v213_v3  ;;  %352 = vst [vmem:[#allocation8 + $0xa0] sm:$0xff] %v324_v4 }
 0x128   :  { %505 = shalt.err (!%p502_p0)
}
 0x129   :  { %s506_s26 = scalar_lea.hbm %s651_s3, 3072 }
 0x12a   :  { %p507_p1 = scmp.ne.s32.totalorder %s651_s3, %s506_s26  ;;  %p510_p2 = scmp.lt.u32.totalorder %s506_s26, %s651_s3 }
 0x12c   :  { %p512_p3 = pnand %p510_p2, %p507_p1 }
 0x12e   :  { %515 = shalt.err (!%p512_p3)
}
 0x12f   :  { %s529_s4 = smov 384   ;;  %s530_s5 = smov 24  }
 0x130   :  { %367 = dma.vmem_to_hbm [thread:$0]  %s362_s22, 3072, %s651_s3, [#allocation4], %s529_s4, %s529_s4, %s530_s5  }
 0x131   :  { %520 = dma.done.wait [#allocation4], 3072  }
 0x132   :  { %521 = vsyncadd [#allocation4], 4294964224 }
 0x133   :  { %371 = vsyncpa [#allocation3], 1 }
 0x134   :  { %372 = vsyncpa [#allocation6], 1 }
 0x135   :  { %373 = vsyncpa [#allocation4], 1 }

</bundles_post_ra>
